<compile_context>
chip_gen: v5e
topology: v5e:2x2
jax: 0.10.0
libtpu: 0.0.40
codegen_flags: <defaults>
</compile_context>

<pallas_src>
import functools
import math

import jax
import jax.numpy as jnp
from jax import lax
from jax.experimental import pallas as pl
from jax.experimental.pallas import tpu as pltpu


def _round_up(v, m):
    return ((v + m - 1) // m) * m


# Scoped-VMEM allowance: above the 16/32 MiB defaults (v5e / v6e-v7x) but
# comfortably inside v7x's 64 MiB physical VMEM (v5e/v6e have 128 MiB).
_VMEM_LIMIT_BYTES = 48 * 1024 * 1024
# Keep the *estimated* per-step working set well under that limit.
_VMEM_BUDGET_BYTES = 28 * 1024 * 1024


# ------------------------- fused im2col + GEMM path --------------------------

def _fused_conv_kernel(x_ref, w_ref, o_ref, *, taps, s_keep):
    """Fused im2col + GEMM for one image.

    x_ref : (1, C, H*W)          raw activation, f32
    w_ref : (out_c, k_h*k_w*C)   weight (compute dtype), columns ordered (tap, c)
    o_ref : (1, out_c, out_h*W)  f32 conv output on the full-W column grid
    """
    x = x_ref[0]                                           # (C, S) f32
    # Build the im2col slab with K ordered (tap, c); the wrap-around values of
    # the rolls only ever land in columns j >= out_w, which are sliced away
    # outside the kernel, so they never reach the final output.
    parts = [x if d == 0 else jnp.roll(x, -d, axis=-1) for d in taps]
    slab = jnp.concatenate(parts, axis=0)[:, :s_keep]      # (K, s_keep) f32
    slab = slab.astype(w_ref.dtype)
    # Single dot over the full C*k_h*k_w contraction, f32 accumulation (MXU).
    o_ref[0] = jnp.dot(w_ref[...], slab, preferred_element_type=jnp.float32)


def _fused_vmem_estimate(C, S, s_keep, out_c, K):
    x_blk = C * S * 4                       # f32 input block (double-buffered)
    out_blk = out_c * s_keep * 4            # f32 output block (double-buffered)
    w_blk = out_c * K * 2
    slab = K * S * 4 + K * s_keep * 2       # f32 slab value + bf16 copy
    return 2 * x_blk + 2 * out_blk + 2 * w_blk + slab


def _fused_conv(x, weight, *, k_h, k_w, out_c, out_h, out_w,
                compute_dtype=jnp.bfloat16):
    N, C, H, W = x.shape
    S = H * W
    s_keep = out_h * W
    KK = k_h * k_w
    K = C * KK

    # Bug-parity weight flattening (torch: weight.reshape(-1, out_c)), then
    # permute the columns from (c, tap) to (tap, c) order to match the
    # in-kernel slab, and pre-cast the tiny matrix to the compute dtype.
    w_t = weight.reshape(-1, out_c).T                            # (out_c, K)
    w_perm = (w_t.reshape(out_c, C, KK).transpose(0, 2, 1)
                 .reshape(out_c, K).astype(compute_dtype))       # K = (tap, c)

    taps = tuple(kh * W + kw for kh in range(k_h) for kw in range(k_w))
    x_flat = x.reshape(N, C, S)                                  # metadata-only

    kernel = functools.partial(_fused_conv_kernel, taps=taps, s_keep=s_keep)
    cost = pl.CostEstimate(
        flops=2 * N * s_keep * K * out_c,
        transcendentals=0,
        bytes_accessed=N * C * S * 4 + out_c * K * 2 + N * out_c * s_keep * 4)

    out = pl.pallas_call(
        kernel,
        out_shape=jax.ShapeDtypeStruct((N, out_c, s_keep), jnp.float32),
        grid=(N,),
        in_specs=[
            pl.BlockSpec((1, C, S), lambda n: (n, 0, 0)),
            pl.BlockSpec((out_c, K), lambda n: (0, 0)),
        ],
        out_specs=pl.BlockSpec((1, out_c, s_keep), lambda n: (n, 0, 0)),
        compiler_params=pltpu.CompilerParams(
            dimension_semantics=("parallel",),
            vmem_limit_bytes=_VMEM_LIMIT_BYTES),
        cost_estimate=cost,
    )(x_flat, w_perm)

    # Rows 0..out_h-1 already came out of the kernel; drop the trailing
    # k_w-1 columns of each row (thin strided slice of the small f32 output).
    return out.reshape(N, out_c, out_h, W)[:, :, :, :out_w]


# ----------------------- generic GEMM fallback kernels ------------------------

def _convmm_kernel(x_ref, wt_ref, o_ref):
    """Single-shot: o[n, :, j-block] = w_t @ x[n, :, j-block]."""
    o_ref[0] = jnp.dot(
        wt_ref[...], x_ref[0], preferred_element_type=jnp.float32
    ).astype(o_ref.dtype)


def _convmm_kernel_ktiled(x_ref, wt_ref, o_ref, *, K_total, tk, mask_tail):
    """Large-K fallback: accumulate directly into the resident f32 output."""
    k = pl.program_id(2)

    @pl.when(k == 0)
    def _():
        o_ref[...] = jnp.zeros_like(o_ref)

    xblk = x_ref[0]
    if mask_tail:
        # x is NOT K-padded in HBM; the last K block is partial and its stale
        # VMEM tail could hold NaNs (0-weight * NaN = NaN), so force the tail
        # rows to real zeros before the dot.
        rem = K_total - k * tk
        rows = lax.broadcasted_iota(jnp.int32, xblk.shape, 0)
        xblk = jnp.where(rows < rem, xblk, jnp.zeros_like(xblk))

    o_ref[0] += jnp.dot(wt_ref[...], xblk, preferred_element_type=jnp.float32)


def _pick_tp(K, P, itemsize, target_bytes=2 * 1024 * 1024):
    # Scale the lane-dense tile with K so each x block is ~1-4 MiB instead of
    # a fixed 512 lanes (amortises the ~0.35us/grid-step overhead).
    tp = _round_up(max(target_bytes // max(K * itemsize, 1), 128), 128)
    tp = max(512, min(tp, 4096))
    return min(tp, _round_up(P, 128))


def _conv_matmul_nct(x_kp, w_t, *, tk=512, k_single_max=4096):
    """out[n, o, p] = sum_k w_t[o, k] * x_kp[n, k, p], f32 accumulation."""
    N, K, P = x_kp.shape
    out_c, K2 = w_t.shape
    assert K == K2
    itemsize = x_kp.dtype.itemsize
    tp = _pick_tp(K, P, itemsize)

    cost = pl.CostEstimate(
        flops=2 * N * P * K * out_c,
        transcendentals=0,
        bytes_accessed=(x_kp.size * itemsize + w_t.size * w_t.dtype.itemsize
                        + N * out_c * P * 4))

    def single_fits(tp_):
        return (2 * K * tp_ * itemsize          # double-buffered x blocks
                + out_c * K * w_t.dtype.itemsize  # single-buffered weight
                + 2 * out_c * tp_ * 4) <= _VMEM_BUDGET_BYTES

    if K <= k_single_max:
        while tp > 128 and not single_fits(tp):
            tp = max(128, tp // 2)
        if single_fits(tp):
            return pl.pallas_call(
                _convmm_kernel,
                out_shape=jax.ShapeDtypeStruct((N, out_c, P), jnp.float32),
                grid=(N, pl.cdiv(P, tp)),
                in_specs=[
                    pl.BlockSpec((1, K, tp), lambda n, j: (n, 0, j)),
                    # Grid-invariant weight: single-buffer it (no benefit from
                    # double buffering a constant block).
                    pl.BlockSpec((out_c, K), lambda n, j: (0, 0),
                                 pipeline_mode=pl.Buffered(1)),
                ],
                out_specs=pl.BlockSpec((1, out_c, tp),
                                       lambda n, j: (n, 0, j)),
                compiler_params=pltpu.CompilerParams(
                    dimension_semantics=("parallel", "parallel"),
                    vmem_limit_bytes=_VMEM_LIMIT_BYTES),
                cost_estimate=cost,
            )(x_kp, w_t)

    # K-tiled accumulation path: K is the last ("arbitrary") grid axis and the
    # output block stays resident.  Only the tiny weight is zero-padded along
    # K; x_kp is NOT padded (no extra HBM read+write pass) -- the kernel masks
    # the stale tail of the last partial K block instead.
    n_k = pl.cdiv(K, tk)
    Kp = n_k * tk
    if Kp != K:
        w_t = jnp.pad(w_t, ((0, 0), (0, Kp - K)))
    while tp > 128 and (2 * tk * tp * itemsize
                        + 2 * out_c * tk * w_t.dtype.itemsize
                        + 2 * out_c * tp * 4) > _VMEM_BUDGET_BYTES:
        tp = max(128, tp // 2)
    kern = functools.partial(_convmm_kernel_ktiled, K_total=K, tk=tk,
                             mask_tail=(K % tk != 0))
    return pl.pallas_call(
        kern,
        out_shape=jax.ShapeDtypeStruct((N, out_c, P), jnp.float32),
        grid=(N, pl.cdiv(P, tp), n_k),
        in_specs=[
            pl.BlockSpec((1, tk, tp), lambda n, j, k: (n, k, j)),
            pl.BlockSpec((out_c, tk), lambda n, j, k: (0, k)),
        ],
        out_specs=pl.BlockSpec((1, out_c, tp), lambda n, j, k: (n, 0, j)),
        compiler_params=pltpu.CompilerParams(
            dimension_semantics=("parallel", "parallel", "arbitrary"),
            vmem_limit_bytes=_VMEM_LIMIT_BYTES),
        cost_estimate=cost,
    )(x_kp, w_t)


# ------------------------------- im2col glue --------------------------------

def _im2col_t_fast(x, k_h, k_w, stride, out_h, out_w):
    """Shifted-slice im2col, transposed: (N, C*k_h*k_w, out_h*out_w).

    Valid exactly when the torch as_strided stride trick is itself a true
    im2col (padding == 0 and H == W); lowers to plain strided copies.
    """
    N, C, H, W = x.shape
    cols = []
    for kh in range(k_h):
        for kw in range(k_w):
            cols.append(
                lax.slice(
                    x,
                    (0, 0, kh, kw),
                    (N, C,
                     kh + (out_h - 1) * stride + 1,
                     kw + (out_w - 1) * stride + 1),
                    (1, 1, stride, stride),
                ))  # (N, C, out_h, out_w)
    a = jnp.stack(cols, axis=2)        # (N, C, k_h*k_w, oh, ow); K = (C,kh,kw)
    return a.reshape(N, C * k_h * k_w, out_h * out_w)


def _im2col_t_bugparity(x, k_h, k_w, stride, padding, out_h, out_w):
    """Exact reproduction of the torch forward's as_strided arithmetic.

    The torch code applies *unpadded* strides (C*H*W, H*W, W*stride, stride,
    H, 1) to the *padded* image; only a true im2col when padding == 0 and
    H == W, but kept bug-for-bug for other configurations.
    Returns (N, K, P) = per-image x_tile^T.
    TODO(synk): replace the flat-index gather with per-tap strided slices or
    fuse it into the kernel as manual DMAs; this path is not the hot one.
    """
    N, C, H, W = x.shape
    img = jnp.pad(x, ((0, 0), (0, 0), (padding, padding), (padding, padding)))
    flat = img.reshape(-1)
    sN, sC, sOH, sOW, sKH, sKW = C * H * W, H * W, W * stride, stride, H, 1
    idx = (
        jnp.arange(N)[:, None, None, None, None, None] * sN
        + jnp.arange(C)[None, :, None, None, None, None] * sC
        + jnp.arange(k_h)[None, None, :, None, None, None] * sKH
        + jnp.arange(k_w)[None, None, None, :, None, None] * sKW
        + jnp.arange(out_h)[None, None, None, None, :, None] * sOH
        + jnp.arange(out_w)[None, None, None, None, None, :] * sOW
    )
    a = flat[idx]  # (N, C, k_h, k_w, out_h, out_w)
    return a.reshape(N, C * k_h * k_w, out_h * out_w)


# --------------------------- DenseConv2d forward -----------------------------

@functools.partial(
    jax.jit,
    static_argnames=("kernel_size", "stride", "padding", "out_channels",
                     "compute_dtype"))
def dense_conv2d_forward(x, weight, *, kernel_size, stride, padding,
                         out_channels, compute_dtype=jnp.bfloat16):
    N, C, H, W = x.shape
    k_h, k_w = kernel_size
    out_h = (H + 2 * padding - k_h) // stride + 1
    out_w = (W + 2 * padding - k_w) // stride + 1
    K = C * k_h * k_w

    # Hot path: fused im2col + GEMM, exactly where the torch as_strided
    # arithmetic is a true im2col (padding == 0, H == W) at stride 1, as long
    # as one image (plus slab) fits the VMEM budget.
    if (padding == 0 and H == W and stride == 1 and out_h > 0 and out_w > 0
            and _fused_vmem_estimate(C, H * W, out_h * W, out_channels, K)
            <= _VMEM_BUDGET_BYTES):
        return _fused_conv(x, weight, k_h=k_h, k_w=k_w, out_c=out_channels,
                           out_h=out_h, out_w=out_w,
                           compute_dtype=compute_dtype)

    # Fallback: materialised im2col + GEMM, kept bug-for-bug for padded /
    # non-square / strided configs and for images too large to fuse.
    # TODO(synk): fuse these cases too (halo BlockSpec or pl.ANY + manual
    # per-tap strided DMAs) instead of materialising the (N, K, P) tensor.
    xc = x.astype(compute_dtype)  # cast before im2col -> halves im2col bytes
    if padding == 0 and H == W:
        x_kp = _im2col_t_fast(xc, k_h, k_w, stride, out_h, out_w)
    else:
        x_kp = _im2col_t_bugparity(xc, k_h, k_w, stride, padding, out_h, out_w)

    # Raw row-major reshape, exactly like torch: weight.reshape(-1, out_c)
    # (NOT weight.reshape(out_c, -1).T); transposed so the kernel emits the
    # NCHW-ordered output directly with lane-dense stores.
    w_t = weight.reshape(-1, out_channels).T.astype(compute_dtype)
    out = _conv_matmul_nct(x_kp, w_t)                  # (N, out_c, out_h*out_w)
    return out.reshape(N, out_channels, out_h, out_w)  # metadata-only reshape


class DenseConv2dPallas:
    """JAX/Pallas port of the PyTorch DenseConv2d module's forward pass."""

    def __init__(self, in_c, out_c, kernel_size, stride=1, padding=0,
                 dilation=1, groups=1, bias=True, key=None,
                 compute_dtype=jnp.bfloat16):
        assert groups == 1, "forward's mm path only makes sense for groups == 1"
        self.in_channels = in_c
        self.out_channels = out_c
        self.kernel_size = tuple(kernel_size)
        self.stride = stride
        self.padding = padding
        self.dilation = dilation          # unused in forward (parity with torch)
        self.groups = groups
        self.compute_dtype = compute_dtype
        key = jax.random.PRNGKey(42) if key is None else key
        kw, kb = jax.random.split(key)
        fan_in = in_c * kernel_size[0] * kernel_size[1]
        bound = 1.0 / math.sqrt(fan_in)
        self.weight = jax.random.uniform(
            kw, (out_c, in_c // groups, *kernel_size), jnp.float32,
            minval=-bound, maxval=bound)
        # Bias parameter exists in the module but is never used in forward().
        self.bias = (jax.random.uniform(kb, (out_c,), jnp.float32,
                                        minval=-bound, maxval=bound)
                     if bias else None)

    def __call__(self, x):
        return dense_conv2d_forward(
            x, self.weight,
            kernel_size=self.kernel_size, stride=self.stride,
            padding=self.padding, out_channels=self.out_channels,
            compute_dtype=self.compute_dtype)


# ----------------------------------- main ------------------------------------

if __name__ == "__main__":
    key = jax.random.PRNGKey(0)
    kx, kp = jax.random.split(key)

    N, C, H, W = 2, 4, 16, 16
    out_c, ksize = 8, (3, 3)
    x = jax.random.normal(kx, (N, C, H, W), jnp.float32)

    mod = DenseConv2dPallas(C, out_c, ksize, stride=1, padding=0,
                            groups=1, bias=True, key=kp)

    out = jax.block_until_ready(mod(x))

    # Pure-JAX reference of the *same* (as-written) torch forward semantics.
    k_h, k_w = ksize
    out_h = (H - k_h) + 1
    out_w = (W - k_w) + 1
    x_kp = _im2col_t_bugparity(x, k_h, k_w, 1, 0, out_h, out_w)   # (N, K, P)
    x_tile = jnp.transpose(x_kp, (0, 2, 1)).reshape(N * out_h * out_w, -1)
    w_tile = mod.weight.reshape(-1, out_c)

    def to_nchw(mm):
        return (mm.reshape(N, out_h * out_w, out_c).transpose(0, 2, 1)
                  .reshape(N, out_c, out_h, out_w))

    ref_f32 = to_nchw(x_tile @ w_tile)
    bf = jnp.bfloat16
    ref_bf16 = to_nchw(x_tile.astype(bf).astype(jnp.float32)
                       @ w_tile.astype(bf).astype(jnp.float32))

    assert out.shape == (N, out_c, out_h, out_w), out.shape
    assert out.dtype == jnp.float32, out.dtype
    # Exact math of the kernel (bf16 operands, f32 accumulation).
    err_bf = float(jnp.max(jnp.abs(out - ref_bf16)))
    assert err_bf < 5e-4, f"mismatch vs bf16-input reference: {err_bf}"
    # Loose check vs the original f32 torch.mm semantics (bf16 rounding only).
    assert jnp.allclose(out, ref_f32, atol=3e-2, rtol=3e-2), \
        float(jnp.max(jnp.abs(out - ref_f32)))
    print("KERNEL_OK")
</pallas_src>

<mosaic_0001>
module attributes {stable_mosaic.version = 11 : i64} {
  func.func @_fused_conv_kernel(%arg0: i32, %arg1: memref<1x4x256xf32, #tpu.memory_space<vmem>>, %arg2: memref<8x36xbf16, #tpu.memory_space<vmem>>, %arg3: memref<1x8x224xf32, #tpu.memory_space<vmem>>) attributes {dimension_semantics = [#tpu.dimension_semantics<parallel>], iteration_bounds = array<i64: 2>, scalar_prefetch = 0 : i64, scratch_operands = 0 : i64, tpu.core_type = #tpu.core_type<tc>, window_params = [{transform_indices = @transform_0, window_bounds = array<i64: 1, 4, 256>}, {pipeline_mode = #tpu.pipeline_mode<synchronous>, transform_indices = @transform_1, window_bounds = array<i64: 8, 36>}, {transform_indices = @transform_2, window_bounds = array<i64: 1, 8, 224>}]} {
    %c0 = arith.constant 0 : index
    %c0_0 = arith.constant 0 : index
    %c0_1 = arith.constant 0 : index
    %0 = vector.load %arg1[%c0, %c0_0, %c0_1] : memref<1x4x256xf32, #tpu.memory_space<vmem>>, vector<1x4x256xf32>
    %1 = vector.shape_cast %0 : vector<1x4x256xf32> to vector<4x256xf32>
    %2 = vector.extract_strided_slice %1 {offsets = [0, 1], sizes = [4, 255], strides = [1, 1]} : vector<4x256xf32> to vector<4x255xf32>
    %3 = vector.extract_strided_slice %1 {offsets = [0, 0], sizes = [4, 1], strides = [1, 1]} : vector<4x256xf32> to vector<4x1xf32>
    %4 = tpu.concatenate %2, %3 in 1 : vector<4x255xf32>, vector<4x1xf32> -> vector<4x256xf32>
    %5 = vector.extract_strided_slice %1 {offsets = [0, 2], sizes = [4, 254], strides = [1, 1]} : vector<4x256xf32> to vector<4x254xf32>
    %6 = vector.extract_strided_slice %1 {offsets = [0, 0], sizes = [4, 2], strides = [1, 1]} : vector<4x256xf32> to vector<4x2xf32>
    %7 = tpu.concatenate %5, %6 in 1 : vector<4x254xf32>, vector<4x2xf32> -> vector<4x256xf32>
    %8 = vector.extract_strided_slice %1 {offsets = [0, 16], sizes = [4, 240], strides = [1, 1]} : vector<4x256xf32> to vector<4x240xf32>
    %9 = vector.extract_strided_slice %1 {offsets = [0, 0], sizes = [4, 16], strides = [1, 1]} : vector<4x256xf32> to vector<4x16xf32>
    %10 = tpu.concatenate %8, %9 in 1 : vector<4x240xf32>, vector<4x16xf32> -> vector<4x256xf32>
    %11 = vector.extract_strided_slice %1 {offsets = [0, 17], sizes = [4, 239], strides = [1, 1]} : vector<4x256xf32> to vector<4x239xf32>
    %12 = vector.extract_strided_slice %1 {offsets = [0, 0], sizes = [4, 17], strides = [1, 1]} : vector<4x256xf32> to vector<4x17xf32>
    %13 = tpu.concatenate %11, %12 in 1 : vector<4x239xf32>, vector<4x17xf32> -> vector<4x256xf32>
    %14 = vector.extract_strided_slice %1 {offsets = [0, 18], sizes = [4, 238], strides = [1, 1]} : vector<4x256xf32> to vector<4x238xf32>
    %15 = vector.extract_strided_slice %1 {offsets = [0, 0], sizes = [4, 18], strides = [1, 1]} : vector<4x256xf32> to vector<4x18xf32>
    %16 = tpu.concatenate %14, %15 in 1 : vector<4x238xf32>, vector<4x18xf32> -> vector<4x256xf32>
    %17 = vector.extract_strided_slice %1 {offsets = [0, 32], sizes = [4, 224], strides = [1, 1]} : vector<4x256xf32> to vector<4x224xf32>
    %18 = vector.extract_strided_slice %1 {offsets = [0, 0], sizes = [4, 32], strides = [1, 1]} : vector<4x256xf32> to vector<4x32xf32>
    %19 = tpu.concatenate %17, %18 in 1 : vector<4x224xf32>, vector<4x32xf32> -> vector<4x256xf32>
    %20 = vector.extract_strided_slice %1 {offsets = [0, 33], sizes = [4, 223], strides = [1, 1]} : vector<4x256xf32> to vector<4x223xf32>
    %21 = vector.extract_strided_slice %1 {offsets = [0, 0], sizes = [4, 33], strides = [1, 1]} : vector<4x256xf32> to vector<4x33xf32>
    %22 = tpu.concatenate %20, %21 in 1 : vector<4x223xf32>, vector<4x33xf32> -> vector<4x256xf32>
    %23 = vector.extract_strided_slice %1 {offsets = [0, 34], sizes = [4, 222], strides = [1, 1]} : vector<4x256xf32> to vector<4x222xf32>
    %24 = vector.extract_strided_slice %1 {offsets = [0, 0], sizes = [4, 34], strides = [1, 1]} : vector<4x256xf32> to vector<4x34xf32>
    %25 = tpu.concatenate %23, %24 in 1 : vector<4x222xf32>, vector<4x34xf32> -> vector<4x256xf32>
    %26 = tpu.concatenate %1, %4, %7, %10, %13, %16, %19, %22, %25 in 0 : vector<4x256xf32>, vector<4x256xf32>, vector<4x256xf32>, vector<4x256xf32>, vector<4x256xf32>, vector<4x256xf32>, vector<4x256xf32>, vector<4x256xf32>, vector<4x256xf32> -> vector<36x256xf32>
    %27 = vector.extract_strided_slice %26 {offsets = [0, 0], sizes = [36, 224], strides = [1, 1]} : vector<36x256xf32> to vector<36x224xf32>
    %28 = arith.truncf %27 : vector<36x224xf32> to vector<36x224xbf16>
    %c0_2 = arith.constant 0 : index
    %c0_3 = arith.constant 0 : index
    %29 = vector.load %arg2[%c0_2, %c0_3] : memref<8x36xbf16, #tpu.memory_space<vmem>>, vector<8x36xbf16>
    %cst = arith.constant dense<0.000000e+00> : vector<8x224xf32>
    %30 = tpu.matmul %29, %28, %cst {dimension_numbers = #tpu.dot_dimension_numbers<[1], [0], [0], [1], [0, 0, 1, 1], [], []>} : vector<8x36xbf16>, vector<36x224xbf16>, vector<8x224xf32> -> vector<8x224xf32>
    %c0_4 = arith.constant 0 : index
    %c0_5 = arith.constant 0 : index
    %c0_6 = arith.constant 0 : index
    %31 = vector.load %arg3[%c0_4, %c0_5, %c0_6] : memref<1x8x224xf32, #tpu.memory_space<vmem>>, vector<1x8x224xf32>
    %32 = vector.shape_cast %31 : vector<1x8x224xf32> to vector<8x224xf32>
    %33 = vector.shape_cast %30 : vector<8x224xf32> to vector<1x8x224xf32>
    tpu.vector_store %arg3[%c0_4, %c0_5, %c0_6], %33 {strides = array<i32>} : memref<1x8x224xf32, #tpu.memory_space<vmem>>, vector<1x8x224xf32>,
    return
  }
  func.func @transform_0(%arg0: i32) -> (i32, i32, i32) {
    %c0_i32 = arith.constant 0 : i32
    %c0_i32_0 = arith.constant 0 : i32
    %c0_i32_1 = arith.constant 0 : i32
    return %arg0, %c0_i32, %c0_i32_0 : i32, i32, i32
  }
  func.func @transform_1(%arg0: i32) -> (i32, i32) {
    %c0_i32 = arith.constant 0 : i32
    %c0_i32_0 = arith.constant 0 : i32
    %c0_i32_1 = arith.constant 0 : i32
    return %c0_i32, %c0_i32_0 : i32, i32
  }
  func.func @transform_2(%arg0: i32) -> (i32, i32, i32) {
    %c0_i32 = arith.constant 0 : i32
    %c0_i32_0 = arith.constant 0 : i32
    %c0_i32_1 = arith.constant 0 : i32
    return %arg0, %c0_i32, %c0_i32_0 : i32, i32, i32
  }
}

</mosaic_0001>

<bundles_post_ra>
// kernel: dense_conv2d_forward.1
= control target key start
LH: loop header
LB: loop body
LE: loop exit
PB: predicated region body
PF: predicated region fallthrough
CT: control target
= control target key end

     0   :  { %s516_s9 = smov 0   ;;  %s597_s0 = inlined_call_operand.vmem [shape: f32[2,4,256], index: 0, kind: input, shape index: {}]   ;;  %s598_s1 = inlined_call_operand.vmem [shape: bf16[8,36], index: 1, kind: input, shape index: {}]   ;;  %s599_s2 = inlined_call_operand.vmem [shape: f32[2,8,224], index: 2, kind: output, shape index: {}]  }
   0x1 LB: > { %s414_s10 = sadd.s32 4294967295, %s491_s9   ;;  %p418_p0 = scmp.ge.s32.totalorder %s491_s9, 1  ;;  %s491_s9 = sphi %s516_s9, %s12_s9  }
   0x2   : > { %p112_p1 = scmp.lt.s32.totalorder %s491_s9, 3 }
   0x4   : > { %p113_p2 = pnand %p418_p0, %p112_p1 }
   0x5   : > { %p134_p3 = scmp.lt.s32.totalorder (!%p113_p2), %s414_s10, 1  ;;  %s493_s15 = smov (!%p113_p2), 127  }
   0x6   : > { %116 = sbr.rel (%p113_p2) target bundleno = 409 (0x199), region = 28  ;;  %s494_s16 = smov (!%p113_p2), 112  }
   0x7   : > { %s495_s17 = smov (!%p113_p2), 111   ;;  %s496_s18 = smov (!%p113_p2), 110  }
   0x8   : > { %s497_s19 = smov (!%p113_p2), 96   ;;  %s498_s20 = smov (!%p113_p2), 95  }
   0x9   : > { %s499_s21 = smov (!%p113_p2), 94   ;;  %s500_s22 = smov (!%p113_p2), 126  }
   0xb   : > { %s601_s10 = smov (!%p134_p3, %s414_s10), 1  ;;  %vm154_vm0 = vcmask 1039360   ;;  %vm220_vm1 = vcmask 900096   ;;  %vm253_vm2 = vcmask 777216   ;;  %vm187_vm3 = vcmask 916480  }
   0xc   : > { %s427_s11 = sshll.u32 %s601_s10, 3  ;;  %vm236_vm4 = vcmask 785408   ;;  %vm203_vm5 = vcmask 908288   ;;  %vm269_vm6 = vcmask 769024   ;;  %vm324_vm7 = vcmask 1041408   ;;  %s428_s25 = sshll.u32 %s601_s10, 4 }
   0xd   : > { %s138_s14 = scalar_lea.vmem %s597_s0, %s427_s11  ;;  %vm170_vm8 = vcmask 1031168   ;;  %vm304_vm9 = vcmask 1043456   ;;  %vm320_vm10 = vcmask 293888   ;;  %s143_s28 = scalar_lea.vmem %s599_s2, %s428_s25 }
   0xe   : > { %v530_v0 = vld [vmem:[%s138_s14] sm:$0xff] }
   0xf   : > { %147 = vst [vmem:[#allocation1] ss:$2 sm:$0xff] %v530_v0 }
  0x16   : > { %v148_v1 = vld.sshfl [vmem:[#allocation1] sm:$0xff pattern:$0x75316420]  ;;  %v149_v2 = vld.sshfl [vmem:[#allocation1 + $0x8] sm:$0xff pattern:$0x75316420] }
  0x17   : > { %v445_v3 = vpack.i.bf16 %v149_v2, %v148_v1  ;;  %157 = vst [vmem:[#allocation1] ss:$2 sm:$0xff] %v530_v0 }
  0x19   : > { %446 = vrot.lane.b32.xlu1 %v445_v3, %s493_s15 }
  0x1e   : > { %v158_v4 = vld.sshfl [vmem:[#allocation1] sm:$0xff pattern:$0x75316420] }
  0x1f   : > { %163 = vst [vmem:[#allocation1] ss:$2 sm:$0xff] %v530_v0  ;;  %159 = vrot.lane.b32.xlu2 %v158_v4, %s493_s15 }
  0x26   : > { %v164_v5 = vld.sshfl [vmem:[#allocation1] sm:$0xff pattern:$0x75316420]  ;;  %v165_v6 = vld.sshfl [vmem:[#allocation1 + $0x8] sm:$0xff pattern:$0x75316420] }
  0x27   : > { %174 = vst [vmem:[#allocation1] ss:$2 sm:$0xff] %v530_v0  ;;  %v480_v28 = vpack.i.bf16 %v165_v6, %v164_v5 }
  0x2e   : > { %v175_v7 = vld.sshfl [vmem:[#allocation1] sm:$0xff pattern:$0x75316420] }
  0x2f   : > { %180 = vst [vmem:[#allocation1] ss:$2 sm:$0xff] %v530_v0 }
  0x36   : > { %v181_v8 = vld.sshfl [vmem:[#allocation1] sm:$0xff pattern:$0x75316420]  ;;  %v182_v9 = vld.sshfl [vmem:[#allocation1 + $0x8] sm:$0xff pattern:$0x75316420] }
  0x37   : > { %190 = vst [vmem:[#allocation1] ss:$2 sm:$0xff] %v530_v0  ;;  %v450_v10 = vpack.i.bf16 %v182_v9, %v181_v8 }
  0x39   : > { %451 = vrot.lane.b32.xlu0 %v450_v10, %s494_s16 }
  0x3e   : > { %v191_v11 = vld.sshfl [vmem:[#allocation1] sm:$0xff pattern:$0x75316420] }
  0x3f   : > { %196 = vst [vmem:[#allocation1] ss:$2 sm:$0xff] %v530_v0 }
  0x46   : > { %v197_v12 = vld.sshfl [vmem:[#allocation1] sm:$0xff pattern:$0x75316420]  ;;  %v198_v13 = vld.sshfl [vmem:[#allocation1 + $0x8] sm:$0xff pattern:$0x75316420] }
  0x47   : > { %207 = vst [vmem:[#allocation1] ss:$2 sm:$0xff] %v530_v0  ;;  %v455_v14 = vpack.i.bf16 %v198_v13, %v197_v12 }
  0x49   : > { %456 = vrot.lane.b32.xlu0 %v455_v14, %s495_s17 }
  0x4e   : > { %v208_v15 = vld.sshfl [vmem:[#allocation1] sm:$0xff pattern:$0x75316420] }
  0x4f   : > { %209 = vrot.lane.b32.xlu1 %v208_v15, %s495_s17  ;;  %213 = vst [vmem:[#allocation1] ss:$2 sm:$0xff] %v530_v0 }
  0x56   : > { %v214_v16 = vld.sshfl [vmem:[#allocation1] sm:$0xff pattern:$0x75316420]  ;;  %v215_v17 = vld.sshfl [vmem:[#allocation1 + $0x8] sm:$0xff pattern:$0x75316420] }
  0x57   : > { %v460_v18 = vpack.i.bf16 %v215_v17, %v214_v16  ;;  %223 = vst [vmem:[#allocation1] ss:$2 sm:$0xff] %v530_v0 }
  0x59   : > { %461 = vrot.lane.b32.xlu1 %v460_v18, %s496_s18 }
  0x5e   : > { %v224_v19 = vld.sshfl [vmem:[#allocation1] sm:$0xff pattern:$0x75316420] }
  0x5f   : > { %229 = vst [vmem:[#allocation1] ss:$2 sm:$0xff] %v530_v0 }
  0x61   : > { %225 = vrot.lane.b32.xlu1 %v224_v19, %s496_s18 }
  0x66   : > { %v230_v20 = vld.sshfl [vmem:[#allocation1] sm:$0xff pattern:$0x75316420]  ;;  %v231_v21 = vld.sshfl [vmem:[#allocation1 + $0x8] sm:$0xff pattern:$0x75316420] }
  0x67   : > { %v465_v22 = vpack.i.bf16 %v231_v21, %v230_v20  ;;  %240 = vst [vmem:[#allocation1] ss:$2 sm:$0xff] %v530_v0 }
  0x69   : > { %192 = vrot.lane.b32.xlu1 %v191_v11, %s494_s16  ;;  %466 = vrot.lane.b32.xlu2 %v465_v22, %s497_s19 }
  0x6e   : > { %v241_v23 = vld.sshfl [vmem:[#allocation1] sm:$0xff pattern:$0x75316420] }
  0x6f   : > { %242 = vrot.lane.b32.xlu0 %v241_v23, %s497_s19  ;;  %246 = vst [vmem:[#allocation1] ss:$2 sm:$0xff] %v530_v0 }
  0x76   : > { %v247_v24 = vld.sshfl [vmem:[#allocation1] sm:$0xff pattern:$0x75316420]  ;;  %v248_v25 = vld.sshfl [vmem:[#allocation1 + $0x8] sm:$0xff pattern:$0x75316420] }
  0x77   : > { %v470_v26 = vpack.i.bf16 %v248_v25, %v247_v24  ;;  %256 = vst [vmem:[#allocation1] ss:$2 sm:$0xff] %v530_v0 }
  0x79   : > { %471 = vrot.lane.b32.xlu2 %v470_v26, %s498_s20  ;;  %v549_v33 = vpop.permute.xlu2 %159 }
  0x7e   : > { %v257_v27 = vld.sshfl [vmem:[#allocation1] sm:$0xff pattern:$0x75316420] }
  0x7f   : > { %262 = vst [vmem:[#allocation1] ss:$2 sm:$0xff] %v530_v0 }
  0x81   : > { %258 = vrot.lane.b32.xlu2 %v257_v27, %s498_s20 }
  0x86   : > { %v263_v29 = vld.sshfl [vmem:[#allocation1] sm:$0xff pattern:$0x75316420]  ;;  %v264_v30 = vld.sshfl [vmem:[#allocation1 + $0x8] sm:$0xff pattern:$0x75316420] }
  0x87   : > { %v475_v31 = vpack.i.bf16 %v264_v30, %v263_v29  ;;  %273 = vst [vmem:[#allocation1] ss:$2 sm:$0xff] %v530_v0 }
  0x89   : > { %476 = vrot.lane.b32.xlu0 %v475_v31, %s499_s21  ;;  %481 = vrot.lane.b32.xlu2 %v480_v28, %s500_s22 }
  0x8b   : > { %v551_v34 = vpop.permute.xlu1 %446 }
  0x8c   : > { %v449_v47 = vunpack.i.h.bf16 %v551_v34  ;;  %v448_v48 = vunpack.i.l.bf16 %v551_v34 }
  0x8e   : > { %v274_v32 = vld.sshfl [vmem:[#allocation1] sm:$0xff pattern:$0x75316420]  ;;  %v155_v60 = vsel %vm154_vm0, %v448_v48, %v449_v47  ;;  %v162_v28 = vsel %vm154_vm0, %v449_v47, %v549_v33 }
  0x8f   : > { %279 = vst [vmem:[#allocation1] ss:$2 sm:$0xff] %v530_v0  ;;  %v285_v8 = vrot.slane %v155_v60, 4 }
  0x91   : > { %275 = vrot.lane.b32.xlu0 %v274_v32, %s499_s21 }
  0x96   : > { %v280_v16 = vld.sshfl [vmem:[#allocation1] sm:$0xff pattern:$0x75316420]  ;;  %v281_v33 = vld.sshfl [vmem:[#allocation1 + $0x8] sm:$0xff pattern:$0x75316420] }
  0x97   : > { %v305_v26 = vsel %vm304_vm9, %v280_v16, %v285_v8 }
  0x99   : > { %176 = vrot.lane.b32.xlu0 %v175_v7, %s500_s22 }
  0xab   : > { %v553_v36 = vpop.permute.xlu0 %451 }
  0xac   : > { %v454_v49 = vunpack.i.h.bf16 %v553_v36  ;;  %v453_v50 = vunpack.i.l.bf16 %v553_v36 }
  0xae   : > { %v188_v61 = vsel %vm187_vm3, %v453_v50, %v454_v49 }
  0xaf   : > { %v290_v11 = vrot.slane %v188_v61, 4 }
  0xbb   : > { %v457_v39 = vpop.permute.xlu0 %456 }
  0xbc   : > { %v459_v53 = vunpack.i.h.bf16 %v457_v39  ;;  %v458_v54 = vunpack.i.l.bf16 %v457_v39 }
  0xbe   : > { %v204_v2 = vsel %vm203_vm5, %v458_v54, %v459_v53 }
  0xc1   : > { %v210_v37 = vpop.permute.xlu1 %209 }
  0xc2   : > { %v212_v23 = vsel %vm203_vm5, %v459_v53, %v210_v37  ;;  %v319_v37 = vld [vmem:[%s598_s1] sm:$0xf] }
  0xc3   : > { %v467_v35 = vpop.permute.xlu2 %466 }
  0xc4   : > { %v469_v51 = vunpack.i.h.bf16 %v467_v35  ;;  %v468_v52 = vunpack.i.l.bf16 %v467_v35  ;;  %v286_v35 = vrot.slane %v162_v28, 4 }
  0xc6   : > { %v237_v3 = vsel %vm236_vm4, %v468_v52, %v469_v51 }
  0xcb   : > { %v462_v40 = vpop.permute.xlu1 %461 }
  0xcc   : > { %v464_v43 = vunpack.i.h.bf16 %v462_v40  ;;  %v463_v44 = vunpack.i.l.bf16 %v462_v40 }
  0xce   : > { %v221_v55 = vsel %vm220_vm1, %v463_v44, %v464_v43 }
  0xcf   : > { %v295_v0 = vrot.slane %v221_v55, 4 }
  0xd1   : > { %v309_v13 = vsel %vm304_vm9, %v204_v2, %v295_v0 }
  0xd3   : > { %v472_v38 = vpop.permute.xlu2 %471  ;;  %v226_v56 = vpop.permute.xlu1 %225 }
  0xd4   : > { %v474_v45 = vunpack.i.h.bf16 %v472_v38  ;;  %v473_v46 = vunpack.i.l.bf16 %v472_v38  ;;  %v228_v9 = vsel %vm220_vm1, %v464_v43, %v226_v56 }
  0xd5   : > { %v296_v17 = vrot.slane %v228_v9, 4 }
  0xd6   : > { %v254_v57 = vsel %vm253_vm2, %v473_v46, %v474_v45 }
  0xd7   : > { %v300_v1 = vrot.slane %v254_v57, 4  ;;  %v310_v30 = vsel %vm304_vm9, %v212_v23, %v296_v17 }
  0xd9   : > { %v311_v14 = vsel %vm304_vm9, %v237_v3, %v300_v1 }
  0xda   : > { %v315_v22 = vpack.c.bf16 %v311_v14, %v309_v13 }
  0xdb   : > { %v259_v41 = vpop.permute.xlu2 %258  ;;  %v193_v24 = vpop.permute.xlu1 %192 }
  0xdc   : > { %v261_v10 = vsel %vm253_vm2, %v474_v45, %v259_v41  ;;  %v195_v32 = vsel %vm187_vm3, %v454_v49, %v193_v24  ;;  %v306_v41 = vsel %vm304_vm9, %v281_v33, %v286_v35 }
  0xdd   : > { %v301_v18 = vrot.slane %v261_v10, 4  ;;  %v291_v38 = vrot.slane %v195_v32, 4 }
  0xe1   : > { %v243_v42 = vpop.permute.xlu0 %242 }
  0xe2   : > { %v245_v20 = vsel %vm236_vm4, %v469_v51, %v243_v42 }
  0xe3   : > { %v482_v58 = vpop.permute.xlu2 %481  ;;  %v312_v31 = vsel %vm304_vm9, %v245_v20, %v301_v18 }
  0xe4   : > { %v484_v4 = vunpack.i.h.bf16 %v482_v58  ;;  %v483_v5 = vunpack.i.l.bf16 %v482_v58  ;;  %v316_v36 = vpack.c.bf16 %v312_v31, %v310_v30 }
  0xe6   : > { %v171_v15 = vsel %vm170_vm8, %v483_v5, %v484_v4 }
  0xe7   : > { %v307_v27 = vsel %vm304_vm9, %v171_v15, %v290_v11 }
  0xe8   : > { %v313_v34 = vpack.c.bf16 %v307_v27, %v305_v26 }
  0xfb   : > { %v477_v59 = vpop.permute.xlu0 %476 }
  0xfc   : > { %v479_v62 = vunpack.i.h.bf16 %v477_v59  ;;  %v478_v63 = vunpack.i.l.bf16 %v477_v59 }
  0xfe   : > { %v270_v6 = vsel %vm269_vm6, %v478_v63, %v479_v62 }
  0xff   : > { %v317_v7 = vpack.c.bf16 %v270_v6, %v270_v6 }
 0x101   : > { %v326_v12 = vsel %vm324_vm7, %v317_v7, 0 }
 0x102   : > { %336 = vmatpush.bf16.msra.mxu0 %v326_v12 }
 0x103   : > { %v276_v19 = vpop.permute.xlu0 %275 }
 0x104   : > { %v278_v21 = vsel %vm269_vm6, %v479_v62, %v276_v19 }
 0x105   : > { %v318_v25 = vpack.c.bf16 %v278_v21, %v278_v21 }
 0x106   : > { %337 = vmatpush.bf16.msra.mxu0 %v315_v22 }
 0x107   : > { %v329_v29 = vsel %vm324_vm7, %v318_v25, 0 }
 0x108   : > { %349 = vmatpush.bf16.msra.mxu1 %v329_v29 }
 0x10a   : > { %338 = vmatpush.bf16.msra.mxu0 %v313_v34 }
 0x10b   : > { %v177_v39 = vpop.permute.xlu0 %176 }
 0x10c   : > { %v179_v40 = vsel %vm170_vm8, %v484_v4, %v177_v39  ;;  %350 = vmatpush.bf16.msra.mxu1 %v316_v36 }
 0x10d   : > { %423 = vmatmul.msk.bf16.vlgmr.msra.gmra.mxu0 %vm320_vm10, %v319_v37  ;;  %v308_v42 = vsel %vm304_vm9, %v179_v40, %v291_v38 }
 0x10e   : > { %v314_v43 = vpack.c.bf16 %v308_v42, %v306_v41 }
 0x110   : > { %351 = vmatpush.bf16.msra.mxu1 %v314_v43 }
 0x113   : > { %424 = vmatmul.msk.bf16.vlgmr.msra.gmra.mxu1 %vm320_vm10, %v319_v37 }
 0x18a   : > { %v340_v44 = vpop.f32.mrf.mxu0 }
 0x18b   : > { %357 = vst [vmem:[%s143_s28] sm:$0xff] %v340_v44 }
 0x190   : > { %v353_v45 = vpop.f32.mrf.mxu1 }
 0x191   : > { %358 = vst.msk [vmem:[%s143_s28 + $0x8] sm:$0xff] %vm236_vm4, %v353_v45 }
 0x192   : > { %v342_v46 = vpop.f32.mrf.mxu0 }
 0x198   : > { %v355_v47 = vpop.f32.mrf.mxu1 }
 0x199 PF: > { %s12_s9 = sadd.s32 1, %s491_s9  }
 0x19a   : > { %p9_p4 = scmp.ge.s32.totalorder %s12_s9, 4  }
 0x19c   :  { %11 = sbr.rel (!%p9_p4) target bundleno = 1 (0x1), region = 58 }

</bundles_post_ra>
